<compile_context>
chip_gen: v7x
topology: tpu7x:2x2x1
jax: 0.10.0
libtpu: 0.0.40
codegen_flags: <defaults>
</compile_context>

<pallas_src>
import functools

import jax
import jax.numpy as jnp
import numpy as np
from jax.experimental import pallas as pl
from jax.experimental.pallas import tpu as pltpu


def _round_up(x, m):
    return ((x + m - 1) // m) * m


def _make_time_encode_kernel(g, with_bias):
    """Kernel for a (tile_rows, g) block of times against (1, D) frequencies.

    Output block is (tile_rows, g*D): lane chunk [j*D:(j+1)*D] holds the D
    fourier features of time value j of that row.  The per-chunk slice /
    broadcast is cheap XLU/VPU work off the store path; the single concatenated
    store is a full-width (lane-dense) vst.
    """
    if with_bias:
        def kernel(t_ref, w_ref, b_ref, out_ref):
            t = t_ref[...]                                   # (T, g)
            w = w_ref[...]                                   # (1, D)
            b = b_ref[...]                                   # (1, D)
            parts = [jnp.cos(t[:, j:j + 1] * w + b) for j in range(g)]
            val = parts[0] if g == 1 else jnp.concatenate(parts, axis=-1)
            out_ref[...] = val.astype(out_ref.dtype)
    else:
        def kernel(t_ref, w_ref, out_ref):
            t = t_ref[...]                                   # (T, g)
            w = w_ref[...]                                   # (1, D)
            parts = [jnp.cos(t[:, j:j + 1] * w) for j in range(g)]
            val = parts[0] if g == 1 else jnp.concatenate(parts, axis=-1)
            out_ref[...] = val.astype(out_ref.dtype)
    return kernel


@functools.partial(jax.jit, static_argnames=("out_dtype",))
def time_encode(t, freq, bias=None, *, out_dtype=jnp.float32):
    """t: [B, S] (float/int); freq (and optional bias): [1, D]. Returns [B, S, D]."""
    B, S = t.shape
    D = freq.shape[-1]
    R = B * S

    # Lane-packing factor: fold g consecutive time values into the 128-lane axis.
    g = (128 // D) if (D < 128 and 128 % D == 0) else 1
    C = g * D

    # Note: int t above 2**24 loses precision in f32 (matches PyTorch .float()).
    t_flat = t.reshape(R).astype(jnp.float32)
    R_pad = _round_up(R, g)
    if R_pad != R:                       # only for awkward B*S; common case is exact
        t_flat = jnp.pad(t_flat, (0, R_pad - R))
    Rp = R_pad // g
    t_packed = t_flat.reshape(Rp, g)

    # Row tile targeting ~2 MiB output blocks (amortizes per-step overhead,
    # stays well inside scoped VMEM with double buffering on v5e/v6e/v7x).
    rows_target = max(16, _round_up((2 * 1024 * 1024) // (4 * C), 16))
    tile_rows = Rp if Rp <= rows_target else rows_target   # full-array block when tiny
    grid = (pl.cdiv(Rp, tile_rows),)

    with_bias = bias is not None
    kernel = _make_time_encode_kernel(g, with_bias)

    in_specs = [
        pl.BlockSpec((tile_rows, g), lambda i: (i, 0)),     # per-tile time values
        pl.BlockSpec((1, D), lambda i: (0, 0)),             # resident frequencies
    ]
    inputs = [t_packed, freq.reshape(1, D)]
    if with_bias:
        in_specs.append(pl.BlockSpec((1, D), lambda i: (0, 0)))  # resident bias
        inputs.append(bias.reshape(1, D))

    out_bytes = int(Rp) * int(C) * int(np.dtype(out_dtype).itemsize)
    cost = pl.CostEstimate(
        flops=2 * R_pad * D,
        transcendentals=R_pad * D,
        bytes_accessed=out_bytes + 4 * R_pad + 4 * D * (2 if with_bias else 1),
    )

    out = pl.pallas_call(
        kernel,
        out_shape=jax.ShapeDtypeStruct((Rp, C), out_dtype),
        grid_spec=pltpu.PrefetchScalarGridSpec(
            num_scalar_prefetch=0,
            grid=grid,
            in_specs=in_specs,
            out_specs=pl.BlockSpec((tile_rows, C), lambda i: (i, 0)),
        ),
        compiler_params=pltpu.CompilerParams(
            dimension_semantics=("parallel",),
        ),
        cost_estimate=cost,
    )(*inputs)

    result = out.reshape(R_pad, D)       # free row-major reinterpretation
    if R_pad != R:
        result = result[:R]              # only when B*S % g != 0
    return result.reshape(B, S, D)


def init_params(dimension):
    """Match TimeEncode.__init__: w = 1/10**linspace(0,9,D), bias = 0."""
    freq = (1.0 / 10.0 ** np.linspace(0.0, 9.0, dimension)).astype(np.float32)
    freq = jnp.asarray(freq).reshape(1, dimension)
    bias = jnp.zeros((1, dimension), jnp.float32)
    return freq, bias


def _reference(t, freq, bias=None):
    t = t.astype(jnp.float32)[..., None]                    # [B, S, 1]
    out = t * freq.reshape(-1)
    if bias is not None:
        out = out + bias.reshape(-1)
    return jnp.cos(out)


if __name__ == "__main__":
    key = jax.random.PRNGKey(0)

    # Small demo consistent with the module: batch=2, seq=8, fourier dim=32.
    B, S, D = 2, 8, 32
    t = jax.random.uniform(key, (B, S), jnp.float32, 0.0, 100.0)
    freq, bias = init_params(D)

    out = time_encode(t, freq)                      # module bias is zero -> fast path
    jax.block_until_ready(out)
    assert out.shape == (B, S, D)
    assert jnp.allclose(out, _reference(t, freq), atol=1e-5, rtol=1e-5)

    # Explicit-bias path (general Linear(1, D) semantics, e.g. a trained bias).
    out_b = time_encode(t, freq, bias)
    jax.block_until_ready(out_b)
    assert jnp.allclose(out_b, _reference(t, freq, bias), atol=1e-5, rtol=1e-5)

    # Awkward B*S (not a multiple of the lane-packing factor) -> padded tail path.
    t_odd = jax.random.uniform(jax.random.PRNGKey(1), (3, 5), jnp.float32, 0.0, 100.0)
    out_odd = time_encode(t_odd, freq)
    jax.block_until_ready(out_odd)
    assert out_odd.shape == (3, 5, D)
    assert jnp.allclose(out_odd, _reference(t_odd, freq), atol=1e-5, rtol=1e-5)

    # Multi-step grid with a ragged last block (exercises the pipelined path).
    t_big = jax.random.uniform(jax.random.PRNGKey(2), (2, 20480), jnp.float32, 0.0, 100.0)
    out_big = time_encode(t_big, freq)
    jax.block_until_ready(out_big)
    assert jnp.allclose(out_big, _reference(t_big, freq), atol=1e-5, rtol=1e-5)

    # Docstring sanity check: TimeEncode(10)(t=1) -> [cos(1), cos(0.1), ...]
    f10, b10 = init_params(10)
    doc = time_encode(jnp.ones((1, 1), jnp.float32), f10, b10)
    jax.block_until_ready(doc)
    assert jnp.allclose(doc[0, 0, :2], jnp.array([0.5403023, 0.9950042]), atol=1e-4)

    print("KERNEL_OK")
</pallas_src>

<mosaic_0001>
module attributes {stable_mosaic.version = 11 : i64} {
  func.func @kernel(%arg0: i32, %arg1: memref<4x4xf32, #tpu.memory_space<vmem>>, %arg2: memref<1x32xf32, #tpu.memory_space<vmem>>, %arg3: memref<4x128xf32, #tpu.memory_space<vmem>>) attributes {dimension_semantics = [#tpu.dimension_semantics<parallel>], iteration_bounds = array<i64: 1>, scalar_prefetch = 0 : i64, scratch_operands = 0 : i64, tpu.core_type = #tpu.core_type<tc>, window_params = [{transform_indices = @transform_0, window_bounds = array<i64: 4, 4>}, {pipeline_mode = #tpu.pipeline_mode<synchronous>, transform_indices = @transform_1, window_bounds = array<i64: 1, 32>}, {transform_indices = @transform_2, window_bounds = array<i64: 4, 128>}]} {
    %c0 = arith.constant 0 : index
    %c0_0 = arith.constant 0 : index
    %0 = vector.load %arg1[%c0, %c0_0] : memref<4x4xf32, #tpu.memory_space<vmem>>, vector<4x4xf32>
    %c0_1 = arith.constant 0 : index
    %c0_2 = arith.constant 0 : index
    %1 = vector.load %arg2[%c0_1, %c0_2] : memref<1x32xf32, #tpu.memory_space<vmem>>, vector<1x32xf32>
    %2 = vector.extract_strided_slice %0 {offsets = [0, 0], sizes = [4, 1], strides = [1, 1]} : vector<4x4xf32> to vector<4x1xf32>
    %3 = vector.broadcast %2 : vector<4x1xf32> to vector<4x32xf32>
    %4 = vector.broadcast %1 : vector<1x32xf32> to vector<4x32xf32>
    %5 = arith.mulf %3, %4 : vector<4x32xf32>
    %6 = math.cos %5 : vector<4x32xf32>
    %7 = vector.extract_strided_slice %0 {offsets = [0, 1], sizes = [4, 1], strides = [1, 1]} : vector<4x4xf32> to vector<4x1xf32>
    %8 = vector.broadcast %7 : vector<4x1xf32> to vector<4x32xf32>
    %9 = vector.broadcast %1 : vector<1x32xf32> to vector<4x32xf32>
    %10 = arith.mulf %8, %9 : vector<4x32xf32>
    %11 = math.cos %10 : vector<4x32xf32>
    %12 = vector.extract_strided_slice %0 {offsets = [0, 2], sizes = [4, 1], strides = [1, 1]} : vector<4x4xf32> to vector<4x1xf32>
    %13 = vector.broadcast %12 : vector<4x1xf32> to vector<4x32xf32>
    %14 = vector.broadcast %1 : vector<1x32xf32> to vector<4x32xf32>
    %15 = arith.mulf %13, %14 : vector<4x32xf32>
    %16 = math.cos %15 : vector<4x32xf32>
    %17 = vector.extract_strided_slice %0 {offsets = [0, 3], sizes = [4, 1], strides = [1, 1]} : vector<4x4xf32> to vector<4x1xf32>
    %18 = vector.broadcast %17 : vector<4x1xf32> to vector<4x32xf32>
    %19 = vector.broadcast %1 : vector<1x32xf32> to vector<4x32xf32>
    %20 = arith.mulf %18, %19 : vector<4x32xf32>
    %21 = math.cos %20 : vector<4x32xf32>
    %22 = tpu.concatenate %6, %11, %16, %21 in 1 : vector<4x32xf32>, vector<4x32xf32>, vector<4x32xf32>, vector<4x32xf32> -> vector<4x128xf32>
    %c0_3 = arith.constant 0 : index
    %c0_4 = arith.constant 0 : index
    %23 = vector.load %arg3[%c0_3, %c0_4] : memref<4x128xf32, #tpu.memory_space<vmem>>, vector<4x128xf32>
    tpu.vector_store %arg3[%c0_3, %c0_4], %22 {strides = array<i32>} : memref<4x128xf32, #tpu.memory_space<vmem>>, vector<4x128xf32>,
    return
  }
  func.func @transform_0(%arg0: i32) -> (i32, i32) {
    %c0_i32 = arith.constant 0 : i32
    %c0_i32_0 = arith.constant 0 : i32
    return %arg0, %c0_i32 : i32, i32
  }
  func.func @transform_1(%arg0: i32) -> (i32, i32) {
    %c0_i32 = arith.constant 0 : i32
    %c0_i32_0 = arith.constant 0 : i32
    %c0_i32_1 = arith.constant 0 : i32
    return %c0_i32, %c0_i32_0 : i32, i32
  }
  func.func @transform_2(%arg0: i32) -> (i32, i32) {
    %c0_i32 = arith.constant 0 : i32
    %c0_i32_0 = arith.constant 0 : i32
    return %arg0, %c0_i32 : i32, i32
  }
}

</mosaic_0001>

<bundles_post_ra>
// kernel: time_encode.1
= control target key start
LH: loop header
LB: loop body
LE: loop exit
PB: predicated region body
PF: predicated region fallthrough
CT: control target
= control target key end

     0   :  { %v542_v0 = vmov 3   ;;  %v543_v1 = vmov 1   ;;  %v544_v3 = vmov 2   ;;  %v545_v4 = vmov 0   ;;  %s554_s13 = smov 64   ;;  %s946_s0 = inlined_call_operand.vmem [shape: f32[4,4], index: 0, kind: input, shape index: {}]   ;;  %s947_s1 = inlined_call_operand.vmem [shape: f32[1,32], index: 1, kind: input, shape index: {}]   ;;  %s948_s2 = inlined_call_operand.vmem [shape: f32[4,128], index: 2, kind: output, shape index: {}]  }
   0x1   :  { %523 = vset.pattern.permute.xlu1 %v542_v0  ;;  %521 = vset.pattern.permute.xlu0 %v543_v1  ;;  %v11_v2 = vld [vmem:[%s946_s0] sm:$0xf]  ;;  %v546_v41 = vmov 2102212464   ;;  %v547_v46 = vmov 920167782  }
   0x2   :  { %345 = vperm.xlu1 %523, %v11_v2   ;;  %129 = vperm.xlu0 %521, %v11_v2   ;;  %v475_v5 = vld [vmem:[%s947_s1] ss:$0 sm:$0xff]  ;;  %v548_v51 = vmov 1326507024   ;;  %s552_s0 = smov 32   ;;  %s553_s1 = smov 96  }
   0x6   :  { %522 = vset.pattern.permute.xlu0 %v544_v3  ;;  %524 = vset.pattern.permute.xlu1 %v545_v4 }
   0x7   :  { %237 = vperm.xlu0 %522, %v11_v2   ;;  %15 = vperm.xlu1 %524, %v11_v2  }
   0xb   :  { %525 = vset.pattern.permute.xlu0 %v542_v0 }
  0x81   :  { %v346_v6 = vpop.permute.xlu1 %345  ;;  %v130_v7 = vpop.permute.xlu0 %129 }
  0x82   :  { %v576_v8 = vmul.f32 %v475_v5, %v346_v6  ;;  %v578_v9 = vmul.f32 %v475_v5, %v130_v7  ;;  %v549_v7 = vmov 683565275  }
  0x84   :  { %v352_v10 = vand.u32 2139095040, %v576_v8  ;;  %v136_v11 = vand.u32 2139095040, %v578_v9  ;;  %v133_v18 = vand.u32 2147483647, %v578_v9  ;;  %v349_v21 = vand.u32 2147483647, %v576_v8 }
  0x86   :  { %v353_v12 = vshrl.u32 %v352_v10, 23  ;;  %v137_v13 = vshrl.u32 %v136_v11, 23  ;;  %v238_v14 = vpop.permute.xlu0 %237  ;;  %v16_v15 = vpop.permute.xlu1 %15  ;;  %v140_v28 = vand.u32 8388607, %v133_v18  ;;  %v356_v30 = vand.u32 8388607, %v349_v21 }
  0x87   :  { %v582_v16 = vmul.f32 %v475_v5, %v238_v14  ;;  %v584_v17 = vmul.f32 %v475_v5, %v16_v15  ;;  %v550_v11 = vmov 2475754826  }
  0x88   :  { %v488_v19 = vadd.s32 4294967169, %v353_v12  ;;  %v480_v20 = vadd.s32 4294967169, %v137_v13  ;;  %v141_v39 = vor.u32 8388608, %v140_v28  ;;  %v357_v44 = vor.u32 8388608, %v356_v30 }
  0x89   :  { %v244_v22 = vand.u32 2139095040, %v582_v16  ;;  %v28_v23 = vand.u32 2139095040, %v584_v17  ;;  %v25_v29 = vand.u32 2147483647, %v584_v17  ;;  %v551_v13 = vmov 2131351028  }
  0x8a   :  { %v359_v24 = vadd.s32 1, %v488_v19  ;;  %v143_v25 = vadd.s32 1, %v480_v20  ;;  %v637_v63 = vshll.u32 %v141_v39, 8  ;;  %v639_v0 = vshll.u32 %v357_v44, 8 }
  0x8b   :  { %v245_v26 = vshrl.u32 %v244_v22, 23  ;;  %v29_v27 = vshrl.u32 %v28_v23, 23  ;;  %v606_v43 = vand.u32 8388607, %v25_v29 }
  0x8c   :  { %vm360_vm0 = vcmp.gt.s32.totalorder %v359_v24, 0  ;;  %vm144_vm1 = vcmp.gt.s32.totalorder %v143_v25, 0 }
  0x8d   :  { %v361_v31 = vsel %vm360_vm0, %v359_v24, 0  ;;  %v145_v32 = vsel %vm144_vm1, %v143_v25, 0  ;;  %v484_v33 = vadd.s32 4294967169, %v245_v26  ;;  %v476_v34 = vadd.s32 4294967169, %v29_v27 }
  0x8e   :  { %v595_v35 = vand.u32 31, %v361_v31  ;;  %v597_v36 = vand.u32 31, %v145_v32  ;;  %v608_v45 = vshrl.u32 %v361_v31, 5  ;;  %v612_v48 = vshrl.u32 %v145_v32, 5 }
  0x8f   :  { %v251_v37 = vadd.s32 1, %v484_v33  ;;  %v35_v38 = vadd.s32 1, %v476_v34  ;;  %v33_v3 = vor.u32 8388608, %v606_v43 }
  0x90   :  { %v600_v40 = vsub.s32 32, %v595_v35  ;;  %v375_v42 = vshll.u32 %v546_v41, %v595_v35  ;;  %v378_v47 = vshll.u32 %v547_v46, %v595_v35  ;;  %v615_v49 = vsub.s32 32, %v597_v36 }
  0x91   :  { %vm252_vm2 = vcmp.gt.s32.totalorder %v251_v37, 0  ;;  %vm36_vm3 = vcmp.gt.s32.totalorder %v35_v38, 0  ;;  %vm384_vm4 = vcmp.lt.s32.totalorder %v608_v45, 4  ;;  %v159_v58 = vshll.u32 %v546_v41, %v597_v36 }
  0x92   :  { %v376_v50 = vshrl.u32 %v547_v46, %v600_v40  ;;  %v379_v52 = vshrl.u32 %v548_v51, %v600_v40  ;;  %v160_v53 = vshrl.u32 %v547_v46, %v615_v49  ;;  %v163_v54 = vshrl.u32 %v548_v51, %v615_v49 }
  0x93   :  { %v625_v55 = vsel %vm252_vm2, %v251_v37, 0  ;;  %v37_v56 = vsel %vm36_vm3, %v35_v38, 0  ;;  %v162_v59 = vshll.u32 %v547_v46, %v597_v36  ;;  %vm168_vm5 = vcmp.lt.s32.totalorder %v612_v48, 4 }
  0x94   :  { %v627_v57 = vor.u32 %v376_v50, %v375_v42  ;;  %v39_v60 = vand.u32 31, %v37_v56  ;;  %v380_v61 = vor.u32 %v379_v52, %v378_v47  ;;  %v635_v62 = vand.u32 31, %v625_v55 }
  0x95   :  { %v641_v1 = vor.u32 %v160_v53, %v159_v58  ;;  %v164_v2 = vor.u32 %v163_v54, %v162_v59  ;;  %v38_v5 = vshrl.u32 %v37_v56, 5  ;;  %v73_v54 = vshll.u32 %v33_v3, 8 }
  0x96   :  { %v648_v4 = vsel %vm384_vm4, %v627_v57, 920167782  ;;  %v40_v6 = vsub.s32 32, %v39_v60  ;;  %v42_v10 = vshll.u32 %v549_v7, %v39_v60  ;;  %v45_v12 = vshll.u32 %v550_v11, %v39_v60 }
  0x97   :  { %v48_v14 = vshll.u32 %v551_v13, %v39_v60  ;;  %v51_v15 = vshll.u32 %v546_v41, %v39_v60  ;;  %v54_v19 = vshll.u32 %v547_v46, %v39_v60  ;;  %v657_v20 = vsel %vm384_vm4, %v380_v61, 1326507024 }
  0x98   :  { %v660_v22 = vsub.s32 32, %v635_v62  ;;  %v41_v23 = vshrl.u32 %v549_v7, %v40_v6  ;;  %v43_v24 = vshrl.u32 %v550_v11, %v40_v6  ;;  %v46_v25 = vshrl.u32 %v551_v13, %v40_v6 }
  0x99   :  { %v49_v26 = vshrl.u32 %v546_v41, %v40_v6  ;;  %v52_v27 = vshrl.u32 %v547_v46, %v40_v6  ;;  %v55_v28 = vshrl.u32 %v548_v51, %v40_v6  ;;  %v174_v30 = vsel %vm168_vm5, %v641_v1, 920167782 }
  0x9a   :  { %v178_v31 = vsel %vm168_vm5, %v164_v2, 1326507024  ;;  %v44_v32 = vor.u32 %v43_v24, %v42_v10  ;;  %vm57_vm6 = vcmp.lt.s32.totalorder %v38_v5, 1  ;;  %v47_v33 = vor.u32 %v46_v25, %v45_v12 }
  0x9b   :  { %v50_v34 = vor.u32 %v49_v26, %v48_v14  ;;  %v53_v37 = vor.u32 %v52_v27, %v51_v15  ;;  %v56_v38 = vor.u32 %v55_v28, %v54_v19  ;;  %vm58_vm7 = vcmp.lt.s32.totalorder %v38_v5, 2 }
  0x9c   :  { %vm59_vm8 = vcmp.lt.s32.totalorder %v38_v5, 3  ;;  %vm60_vm9 = vcmp.lt.s32.totalorder %v38_v5, 4  ;;  %v61_v39 = vsel %vm57_vm6, %v41_v23, %v44_v32  ;;  %v65_v43 = vsel %vm57_vm6, %v44_v32, %v47_v33 }
  0x9d   :  { %v62_v42 = vsel %vm60_vm9, %v50_v34, 2102212464  ;;  %v66_v44 = vsel %vm60_vm9, %v53_v37, 920167782  ;;  %v69_v47 = vsel %vm57_vm6, %v47_v33, %v50_v34  ;;  %v70_v53 = vsel %vm60_vm9, %v56_v38, 1326507024 }
  0x9e   :  { %v63_v50 = vsel %vm59_vm8, %v47_v33, %v62_v42  ;;  %v67_v52 = vsel %vm59_vm8, %v50_v34, %v66_v44  ;;  %v675_v56 = vshrl.u32 %v547_v46, %v660_v22  ;;  %v71_v60 = vsel %vm59_vm8, %v53_v37, %v70_v53 }
  0x9f   :  { %v64_v58 = vsel %vm58_vm7, %v61_v39, %v63_v50  ;;  %v68_v59 = vsel %vm58_vm7, %v65_v43, %v67_v52  ;;  %v72_v61 = vsel %vm58_vm7, %v69_v47, %v71_v60  ;;  %v149_v10 = vshrl.u32 %v549_v7, %v615_v49 }
  0xa0   :  { %v680_v2 = vmul.u32.u64.low %v73_v54, %v68_v59  ;;  %v681_v6 = vmul.u32.u64.high %v73_v54, %v68_v59, %v680_v2  ;;  %v685_v12 = vmul.u32.u64.low %v73_v54, %v72_v61  ;;  %v686_v14 = vmul.u32.u64.high %v73_v54, %v72_v61, %v685_v12 }
  0xa1   :  { %v150_v3 = vshll.u32 %v549_v7, %v597_v36  ;;  %v151_v15 = vshrl.u32 %v550_v11, %v615_v49  ;;  %v153_v19 = vshll.u32 %v550_v11, %v597_v36  ;;  %v154_v5 = vshrl.u32 %v551_v13, %v615_v49 }
  0xa2   :  { %v156_v23 = vshll.u32 %v551_v13, %v597_v36  ;;  %v157_v24 = vshrl.u32 %v546_v41, %v615_v49  ;;  %v80_v25 = vmul.u32 %v73_v54, %v64_v58  ;;  %vm165_vm10 = vcmp.lt.s32.totalorder %v612_v48, 1 }
  0xa3   :  { %v152_v26 = vor.u32 %v151_v15, %v150_v3  ;;  %vm166_vm11 = vcmp.lt.s32.totalorder %v612_v48, 2  ;;  %v83_v27 = vadd.s32 1, %v681_v6  ;;  %v155_v28 = vor.u32 %v154_v5, %v153_v19 }
  0xa4   :  { %v158_v32 = vor.u32 %v157_v24, %v156_v23  ;;  %vm167_vm12 = vcmp.lt.s32.totalorder %v612_v48, 3  ;;  %v705_v33 = vadd.s32 %v680_v2, %v686_v14  ;;  %vm82_vm13 = vc.u32 %v686_v14, %v680_v2 }
  0xa5   :  { %v169_v36 = vsel %vm165_vm10, %v149_v10, %v152_v26  ;;  %v179_v49 = vsel %vm167_vm12, %v641_v1, %v178_v31  ;;  %v84_v34 = vsel %vm82_vm13, %v83_v27, %v681_v6  ;;  %v173_v38 = vsel %vm165_vm10, %v152_v26, %v155_v28 }
  0xa6   :  { %v170_v37 = vsel %vm168_vm5, %v158_v32, 2102212464  ;;  %v175_v39 = vsel %vm167_vm12, %v158_v32, %v174_v30  ;;  %v85_v42 = vadd.s32 %v84_v34, %v80_v25  ;;  %v177_v47 = vsel %vm165_vm10, %v155_v28, %v158_v32 }
  0xa7   :  { %v171_v43 = vsel %vm167_vm12, %v155_v28, %v170_v37  ;;  %v176_v44 = vsel %vm166_vm11, %v173_v38, %v175_v39  ;;  %v722_v1 = vshrl.u32 %v548_v51, %v660_v22  ;;  %v180_v31 = vsel %vm166_vm11, %v177_v47, %v179_v49 }
  0xa8   :  { %v727_v50 = vmul.u32.u64.low %v637_v63, %v176_v44  ;;  %v728_v52 = vmul.u32.u64.high %v637_v63, %v176_v44, %v727_v50  ;;  %v86_v30 = vadd.s32 536870912, %v85_v42  ;;  %v172_v53 = vsel %vm166_vm11, %v169_v36, %v171_v43 }
  0xa9   :  { %v734_v54 = vmul.u32.u64.low %v637_v63, %v180_v31  ;;  %v735_v58 = vmul.u32.u64.high %v637_v63, %v180_v31, %v734_v54  ;;  %v366_v51 = vshll.u32 %v549_v7, %v595_v35  ;;  %v367_v59 = vshrl.u32 %v550_v11, %v600_v40 }
  0xaa   :  { %v369_v60 = vshll.u32 %v550_v11, %v595_v35  ;;  %v370_v61 = vshrl.u32 %v551_v13, %v600_v40  ;;  %v745_v2 = vshrl.u32 %v86_v30, 30  ;;  %v372_v48 = vshll.u32 %v551_v13, %v595_v35 }
  0xab   :  { %v373_v6 = vshrl.u32 %v546_v41, %v600_v40  ;;  %vm381_vm14 = vcmp.lt.s32.totalorder %v608_v45, 1  ;;  %v191_v10 = vadd.s32 1, %v728_v52  ;;  %v365_v12 = vshrl.u32 %v549_v7, %v600_v40 }
  0xac   :  { %v368_v14 = vor.u32 %v367_v59, %v366_v51  ;;  %v371_v3 = vor.u32 %v370_v61, %v369_v60  ;;  %v88_v15 = vshll.u32 %v745_v2, 30  ;;  %v188_v19 = vmul.u32 %v637_v63, %v172_v53 }
  0xad   :  { %vm190_vm15 = vc.u32 %v735_v58, %v727_v50  ;;  %v374_v35 = vor.u32 %v373_v6, %v372_v48  ;;  %vm382_vm0 = vcmp.lt.s32.totalorder %v608_v45, 2  ;;  %vm383_vm1 = vcmp.lt.s32.totalorder %v608_v45, 3 }
  0xae   :  { %v192_v5 = vsel %vm190_vm15, %v191_v10, %v728_v52  ;;  %v389_v23 = vsel %vm381_vm14, %v368_v14, %v371_v3  ;;  %v89_v40 = vsub.s32 %v85_v42, %v88_v15  ;;  %v385_v26 = vsel %vm381_vm14, %v365_v12, %v368_v14 }
  0xaf   :  { %v193_v24 = vadd.s32 %v192_v5, %v188_v19  ;;  %v386_v25 = vsel %vm384_vm4, %v374_v35, 2102212464  ;;  %v391_v63 = vsel %vm383_vm1, %v374_v35, %v648_v4  ;;  %v393_v28 = vsel %vm381_vm14, %v371_v3, %v374_v35 }
  0xb0   :  { %v392_v27 = vsel %vm382_vm0, %v389_v23, %v391_v63  ;;  %v395_v32 = vsel %vm383_vm1, %v627_v57, %v657_v20  ;;  %v91_v36 = vsub.s32 0, %v89_v40  ;;  %v387_v34 = vsel %vm383_vm1, %v371_v3, %v386_v25 }
  0xb1   :  { %v194_v49 = vadd.s32 536870912, %v193_v24  ;;  %v396_v37 = vsel %vm382_vm0, %v393_v28, %v395_v32  ;;  %v782_v39 = vmul.u32.u64.low %v639_v0, %v392_v27  ;;  %v783_v42 = vmul.u32.u64.high %v639_v0, %v392_v27, %v782_v39 }
  0xb2   :  { %v778_v4 = vmul.u32.u64.low %v639_v0, %v396_v37  ;;  %v779_v38 = vmul.u32.u64.high %v639_v0, %v396_v37, %v778_v4  ;;  %v477_v43 = vmin.u32 %v91_v36, %v89_v40  ;;  %v267_v57 = vshll.u32 %v546_v41, %v635_v62 }
  0xb3   :  { %v786_v44 = vshrl.u32 %v194_v49, 30  ;;  %v270_v20 = vshll.u32 %v547_v46, %v635_v62  ;;  %v388_v47 = vsel %vm382_vm0, %v385_v26, %v387_v34  ;;  %v795_v31 = vshrl.u32 %v625_v55, 5 }
  0xb4   :  { %v93_v52 = vclz %v477_v43  ;;  %v799_v53 = vor.u32 %v675_v56, %v267_v57  ;;  %vm406_vm2 = vc.u32 %v779_v38, %v782_v39  ;;  %v407_v51 = vadd.s32 1, %v783_v42 }
  0xb5   :  { %v196_v30 = vshll.u32 %v786_v44, 30  ;;  %v272_v54 = vor.u32 %v722_v1, %v270_v20  ;;  %v404_v45 = vmul.u32 %v639_v0, %v388_v47  ;;  %v241_v60 = vand.u32 2147483647, %v582_v16 }
  0xb6   :  { %v478_v46 = vadd.s32 4294967294, %v93_v52  ;;  %v408_v55 = vsel %vm406_vm2, %v407_v51, %v783_v42  ;;  %vm276_vm3 = vcmp.lt.s32.totalorder %v795_v31, 4  ;;  %v265_v0 = vshrl.u32 %v546_v41, %v660_v22 }
  0xb7   :  { %v805_v59 = vsub.s32 %v193_v24, %v196_v30  ;;  %v409_v1 = vadd.s32 %v408_v55, %v404_v45  ;;  %v282_v61 = vsel %vm276_vm3, %v799_v53, 920167782  ;;  %v286_v48 = vsel %vm276_vm3, %v272_v54, 1326507024 }
  0xb8   :  { %vm479_vm4 = vcmp.lt.s32.totalorder %v478_v46, 0  ;;  %v248_v19 = vand.u32 8388607, %v241_v60  ;;  %v259_v35 = vshrl.u32 %v550_v11, %v660_v22  ;;  %v262_v5 = vshrl.u32 %v551_v13, %v660_v22 }
  0xb9   :  { %v199_v56 = vsub.s32 0, %v805_v59  ;;  %v96_v6 = vsel %vm479_vm4, 0, %v478_v46  ;;  %v410_v15 = vadd.s32 536870912, %v409_v1  ;;  %v264_v41 = vshll.u32 %v551_v13, %v635_v62 }
  0xba   :  { %v97_v10 = vsub.s32 32, %v96_v6  ;;  %v98_v12 = vshll.u32 %v89_v40, %v96_v6  ;;  %v101_v14 = vsub.s32 4294967266, %v96_v6  ;;  %vm27_vm5 = vcmp.lt.s32.totalorder %v584_v17, 0 }
  0xbb   :  { %v481_v3 = vmin.u32 %v199_v56, %v805_v59  ;;  %v189_v40 = vadd.s32 %v727_v50, %v735_v58  ;;  %v832_v63 = vshrl.u32 %v410_v15, 30  ;;  %v258_v26 = vshll.u32 %v549_v7, %v635_v62 }
  0xbc   :  { %v99_v23 = vshrl.u32 %v705_v33, %v97_v10  ;;  %v102_v24 = vadd.s32 127, %v101_v14  ;;  %v261_v27 = vshll.u32 %v550_v11, %v635_v62  ;;  %vm840_vm6 = vcmp.le.f32.partialorder %v25_v29, 0.7853982 }
  0xbd   :  { %v201_v25 = vclz %v481_v3  ;;  %v266_v36 = vor.u32 %v265_v0, %v264_v41  ;;  %v412_v50 = vshll.u32 %v832_v63, 30  ;;  %v257_v58 = vshrl.u32 %v549_v7, %v660_v22 }
  0xbe   :  { %v100_v13 = vor.u32 %v99_v23, %v98_v12  ;;  %v103_v28 = vshll.u32 %v102_v24, 23  ;;  %v260_v49 = vor.u32 %v259_v35, %v258_v26  ;;  %v263_v34 = vor.u32 %v262_v5, %v261_v27 }
  0xbf   :  { %v482_v32 = vadd.s32 4294967294, %v201_v25  ;;  %v249_v62 = vor.u32 8388608, %v248_v19  ;;  %v847_v29 = vsub.s32 %v409_v1, %v412_v50  ;;  %vm273_vm8 = vcmp.lt.s32.totalorder %v795_v31, 1 }
  0xc0   :  { %v104_v37 = vor.u32 4788187, %v103_v28  ;;  %v107_v4 = vcvt.s32.f32 %v100_v13  ;;  %vm275_vm9 = vcmp.lt.s32.totalorder %v795_v31, 3  ;;  %v278_v20 = vsel %vm276_vm3, %v266_v36, 2102212464 }
  0xc1   :  { %vm483_vm7 = vcmp.lt.s32.totalorder %v482_v32, 0  ;;  %v415_v22 = vsub.s32 0, %v847_v29  ;;  %v281_v47 = vsel %vm273_vm8, %v260_v49, %v263_v34  ;;  %v283_v52 = vsel %vm275_vm9, %v266_v36, %v282_v61 }
  0xc2   :  { %v204_v11 = vsel %vm483_vm7, 0, %v482_v32  ;;  %v105_v42 = vand.u32 2147483647, %v104_v37  ;;  %v285_v46 = vsel %vm273_vm8, %v263_v34, %v266_v36  ;;  %v277_v55 = vsel %vm273_vm8, %v257_v58, %v260_v49 }
  0xc3   :  { %v205_v43 = vsub.s32 32, %v204_v11  ;;  %v209_v57 = vsub.s32 4294967266, %v204_v11  ;;  %v206_v7 = vshll.u32 %v805_v59, %v204_v11  ;;  %v489_v45 = vmin.u32 %v415_v22, %v847_v29 }
  0xc4   :  { %v108_v30 = vmul.f32 %v107_v4, %v105_v42  ;;  %v279_v56 = vsel %vm275_vm9, %v263_v34, %v278_v20  ;;  %v287_v59 = vsel %vm275_vm9, %v799_v53, %v286_v48  ;;  %vm274_vm10 = vcmp.lt.s32.totalorder %v795_v31, 2 }
  0xc5   :  { %v207_v54 = vshrl.u32 %v189_v40, %v205_v43  ;;  %v210_v51 = vadd.s32 127, %v209_v57  ;;  %v417_v61 = vclz %v489_v45  ;;  %v284_v10 = vsel %vm274_vm10, %v281_v47, %v283_v52 }
  0xc6   :  { %v109_v1 = vxor.u32 2147483648, %v108_v30  ;;  %v288_v12 = vsel %vm274_vm10, %v285_v46, %v287_v59  ;;  %v289_v14 = vshll.u32 %v249_v62, 8  ;;  %v280_v35 = vsel %vm274_vm10, %v277_v55, %v279_v56 }
  0xc7   :  { %v208_v6 = vor.u32 %v207_v54, %v206_v7  ;;  %v211_v0 = vshll.u32 %v210_v51, 23  ;;  %v490_v53 = vadd.s32 4294967294, %v417_v61  ;;  %v111_v41 = vsub.s32 4, %v745_v2 }
  0xc8   :  { %v110_v3 = vsel %vm27_vm5, %v109_v1, %v108_v30  ;;  %v869_v48 = vmul.u32.u64.low %v289_v14, %v288_v12  ;;  %v870_v23 = vmul.u32.u64.high %v289_v14, %v288_v12, %v869_v48  ;;  %vm879_vm12 = vcmp.le.f32.partialorder %v133_v18, 0.7853982 }
  0xc9   :  { %v212_v15 = vor.u32 4788187, %v211_v0  ;;  %v215_v19 = vcvt.s32.f32 %v208_v6  ;;  %v113_v5 = vsel %vm840_vm6, %v584_v17, %v110_v3  ;;  %vm491_vm11 = vcmp.lt.s32.totalorder %v490_v53, 0 }
  0xca   :  { %526 = vcosq.f32 %v113_v5  ;;  %v872_v24 = vmul.u32.u64.low %v289_v14, %v284_v10  ;;  %v873_v25 = vmul.u32.u64.high %v289_v14, %v284_v10, %v872_v24  ;;  %vm135_vm13 = vcmp.lt.s32.totalorder %v578_v9, 0 }
  0xcb   :  { %v213_v31 = vand.u32 2147483647, %v212_v15  ;;  %528 = vsinq.f32 %v113_v5  ;;  %v420_v27 = vsel %vm491_vm11, 0, %v490_v53  ;;  %v405_v13 = vadd.s32 %v782_v39, %v779_v38 }
  0xcc   :  { %v421_v28 = vsub.s32 32, %v420_v27  ;;  %v425_v32 = vsub.s32 4294967266, %v420_v27  ;;  %v296_v36 = vmul.u32 %v289_v14, %v280_v35  ;;  %vm298_vm14 = vc.u32 %v870_v23, %v872_v24 }
  0xcd   :  { %v216_v26 = vmul.f32 %v215_v19, %v213_v31  ;;  %v299_v58 = vadd.s32 1, %v873_v25  ;;  %v112_v18 = vsel %vm27_vm5, %v111_v41, %v745_v2  ;;  %v422_v49 = vshll.u32 %v847_v29, %v420_v27 }
  0xce   :  { %v423_v34 = vshrl.u32 %v405_v13, %v421_v28  ;;  %v426_v37 = vadd.s32 127, %v425_v32  ;;  %v114_v38 = vsel %vm840_vm6, 0, %v112_v18  ;;  %v219_v4 = vsub.s32 4, %v786_v44 }
  0xcf   :  { %v217_v50 = vxor.u32 2147483648, %v216_v26  ;;  %v300_v62 = vsel %vm298_vm14, %v299_v58, %v873_v25  ;;  %v118_v11 = vand.u32 3, %v114_v38  ;;  %vm351_vm2 = vcmp.lt.s32.totalorder %v576_v8, 0 }
  0xd0   :  { %v424_v2 = vor.u32 %v423_v34, %v422_v49  ;;  %v427_v43 = vshll.u32 %v426_v37, 23  ;;  %v301_v29 = vadd.s32 %v300_v62, %v296_v36  ;;  %v220_v7 = vsel %vm135_vm13, %v219_v4, %v786_v44 }
  0xd1   :  { %v218_v39 = vsel %vm135_vm13, %v217_v50, %v216_v26  ;;  %vm120_vm15 = vcmp.eq.s32.totalorder %v118_v11, 0  ;;  %vm123_vm0 = vcmp.eq.s32.totalorder %v118_v11, 2  ;;  %vm119_vm1 = vcmp.lt.s32.totalorder %v118_v11, 2 }
  0xd2   :  { %v221_v42 = vsel %vm879_vm12, %v578_v9, %v218_v39  ;;  %v428_v57 = vor.u32 4788187, %v427_v43  ;;  %v302_v33 = vadd.s32 536870912, %v301_v29  ;;  %v431_v52 = vcvt.s32.f32 %v424_v2 }
  0xd3   :  { %530 = vcosq.f32 %v221_v42  ;;  %v222_v46 = vsel %vm879_vm12, 0, %v220_v7  ;;  %vm915_vm3 = vcmp.le.f32.partialorder %v349_v21, 0.7853982  ;;  %v435_v12 = vsub.s32 4, %v832_v63 }
  0xd4   :  { %532 = vsinq.f32 %v221_v42  ;;  %v527_v20 = vpop.eup %526  ;;  %v429_v47 = vand.u32 2147483647, %v428_v57  ;;  %v905_v30 = vshrl.u32 %v302_v33, 30  ;;  %v226_v0 = vand.u32 3, %v222_v46 }
  0xd5   :  { %v529_v22 = vpop.eup %528  ;;  %v124_v54 = vxor.u32 2147483648, %v527_v20  ;;  %v436_v48 = vsel %vm351_vm2, %v435_v12, %v832_v63  ;;  %vm225_vm7 = vweird.f32 %v578_v9  ;;  %v297_v32 = vadd.s32 %v872_v24, %v870_v23 }
  0xd6   :  { %v121_v51 = vxor.u32 2147483648, %v529_v22  ;;  %v432_v45 = vmul.f32 %v431_v52, %v429_v47  ;;  %v304_v55 = vshll.u32 %v905_v30, 30  ;;  %vm231_vm4 = vcmp.eq.s32.totalorder %v226_v0, 2 }
  0xd7   :  { %v125_v56 = vsel %vm123_vm0, %v124_v54, %v529_v22  ;;  %vm228_vm5 = vcmp.eq.s32.totalorder %v226_v0, 0  ;;  %vm227_vm6 = vcmp.lt.s32.totalorder %v226_v0, 2  ;;  %v438_v27 = vsel %vm915_vm3, 0, %v436_v48 }
  0xd8   :  { %v122_v59 = vsel %vm120_vm15, %v527_v20, %v121_v51  ;;  %v433_v1 = vxor.u32 2147483648, %v432_v45  ;;  %v305_v44 = vsub.s32 %v301_v29, %v304_v55  ;;  %v442_v28 = vand.u32 3, %v438_v27 }
  0xd9   :  { %v910_v6 = vsel %vm119_vm1, %v122_v59, %v125_v56  ;;  %vm441_vm12 = vweird.f32 %v576_v8  ;;  %vm243_vm13 = vcmp.lt.s32.totalorder %v582_v16, 0  ;;  %vm242_vm14 = vcmp.le.f32.partialorder %v241_v60, 0.7853982 }
  0xda   :  { %v434_v10 = vsel %vm351_vm2, %v433_v1, %v432_v45  ;;  %v307_v14 = vsub.s32 0, %v305_v44  ;;  %vm447_vm9 = vcmp.eq.s32.totalorder %v442_v28, 2  ;;  %vm444_vm10 = vcmp.eq.s32.totalorder %v442_v28, 0 }
  0xdb   :  { %v437_v15 = vsel %vm915_vm3, %v576_v8, %v434_v10  ;;  %vm443_vm11 = vcmp.lt.s32.totalorder %v442_v28, 2  ;;  %v327_v33 = vsub.s32 4, %v905_v30  ;;  %vm333_vm2 = vweird.f32 %v582_v16 }
  0xdc   :  { %534 = vcosq.f32 %v437_v15  ;;  %v485_v5 = vmin.u32 %v307_v14, %v305_v44  ;;  %vm117_vm3 = vweird.f32 %v584_v17 }
  0xdd   :  { %v531_v3 = vpop.eup %530  ;;  %536 = vsinq.f32 %v437_v15  ;;  %v328_v8 = vsel %vm243_vm13, %v327_v33, %v905_v30  ;;  %v127_v30 = vsel %vm117_vm3, nan, %v910_v6 }
  0xde   :  { %v533_v19 = vpop.eup %532  ;;  %v232_v35 = vxor.u32 2147483648, %v531_v3  ;;  %v309_v31 = vclz %v485_v5  ;;  %v330_v7 = vsel %vm242_vm14, 0, %v328_v8 }
  0xdf   :  { %v229_v53 = vxor.u32 2147483648, %v533_v19  ;;  %v334_v22 = vand.u32 3, %v330_v7 }
  0xe0   :  { %v233_v21 = vsel %vm231_vm4, %v232_v35, %v533_v19  ;;  %v486_v40 = vadd.s32 4294967294, %v309_v31  ;;  %vm464_vm4 = vcmask 261120  }
  0xe1   :  { %v230_v25 = vsel %vm228_vm5, %v531_v3, %v229_v53  ;;  %vm339_vm15 = vcmp.eq.s32.totalorder %v334_v22, 2  ;;  %vm336_vm0 = vcmp.eq.s32.totalorder %v334_v22, 0  ;;  %vm335_vm1 = vcmp.lt.s32.totalorder %v334_v22, 2 }
  0xe2   :  { %v234_v41 = vsel %vm227_vm6, %v230_v25, %v233_v21  ;;  %vm487_vm8 = vcmp.lt.s32.totalorder %v486_v40, 0  ;;  %vm466_vm5 = vcmask 523264   ;;  %vm468_vm6 = vcmask 785408  }
  0xe3   :  { %v235_v26 = vsel %vm225_vm7, nan, %v234_v41  ;;  %v312_v13 = vsel %vm487_vm8, 0, %v486_v40 }
  0xe4   :  { %453 = vrot.lane.b32.xlu1 %v235_v26, %s552_s0  ;;  %v313_v63 = vsub.s32 32, %v312_v13  ;;  %v317_v36 = vsub.s32 4294967266, %v312_v13  ;;  %v314_v58 = vshll.u32 %v305_v44, %v312_v13 }
  0xe6   :  { %v535_v50 = vpop.eup %534  ;;  %v315_v18 = vshrl.u32 %v297_v32, %v313_v63  ;;  %v318_v9 = vadd.s32 127, %v317_v36 }
  0xe7   :  { %v537_v49 = vpop.eup %536  ;;  %v448_v34 = vxor.u32 2147483648, %v535_v50 }
  0xe8   :  { %v445_v37 = vxor.u32 2147483648, %v537_v49  ;;  %v316_v38 = vor.u32 %v315_v18, %v314_v58  ;;  %v319_v39 = vshll.u32 %v318_v9, 23 }
  0xe9   :  { %v449_v4 = vsel %vm447_vm9, %v448_v34, %v537_v49 }
  0xea   :  { %v446_v62 = vsel %vm444_vm10, %v535_v50, %v445_v37  ;;  %v320_v11 = vor.u32 4788187, %v319_v39  ;;  %v323_v2 = vcvt.s32.f32 %v316_v38 }
  0xeb   :  { %v450_v23 = vsel %vm443_vm11, %v446_v62, %v449_v4 }
  0xec   :  { %v451_v24 = vsel %vm441_vm12, nan, %v450_v23  ;;  %v321_v42 = vand.u32 2147483647, %v320_v11 }
  0xed   :  { %461 = vrot.lane.b32.xlu1 %v451_v24, %s553_s1 }
  0xee   :  { %v324_v43 = vmul.f32 %v323_v2, %v321_v42 }
  0xf0   :  { %v325_v29 = vxor.u32 2147483648, %v324_v43 }
  0xf2   :  { %v326_v57 = vsel %vm243_vm13, %v325_v29, %v324_v43 }
  0xf3   :  { %v329_v20 = vsel %vm242_vm14, %v582_v16, %v326_v57 }
  0xf4   :  { %538 = vcosq.f32 %v329_v20 }
  0xf5   :  { %540 = vsinq.f32 %v329_v20 }
  0xfe   :  { %v539_v47 = vpop.eup %538 }
  0xff   :  { %v541_v52 = vpop.eup %540  ;;  %v340_v54 = vxor.u32 2147483648, %v539_v47 }
 0x100   :  { %v337_v51 = vxor.u32 2147483648, %v541_v52 }
 0x101   :  { %v341_v46 = vsel %vm339_vm15, %v340_v54, %v541_v52 }
 0x102   :  { %v338_v60 = vsel %vm336_vm0, %v539_v47, %v337_v51 }
 0x103   :  { %v342_v45 = vsel %vm335_vm1, %v338_v60, %v341_v46 }
 0x104   :  { %v343_v55 = vsel %vm333_vm2, nan, %v342_v45 }
 0x105   :  { %457 = vrot.lane.b32.xlu0 %v343_v55, %s554_s13 }
 0x156   :  { %v454_v56 = vpop.permute.xlu1 %453 }
 0x157   :  { %v465_v59 = vsel %vm464_vm4, %v127_v30, %v454_v56 }
 0x15f   :  { %v462_v44 = vpop.permute.xlu1 %461 }
 0x177   :  { %v458_v1 = vpop.permute.xlu0 %457 }
 0x178   :  { %v467_v0 = vsel %vm466_vm5, %v465_v59, %v458_v1 }
 0x179   :  { %v469_v61 = vsel %vm468_vm6, %v467_v0, %v462_v44 }
 0x17a   :  { %470 = vst [vmem:[%s948_s2] sm:$0xf] %v469_v61 }

</bundles_post_ra>
